<compile_context>
chip_gen: v5e
topology: v5e:2x2
jax: 0.10.0
libtpu: 0.0.40
codegen_flags: <defaults>
</compile_context>

<pallas_src>
import jax
import jax.numpy as jnp
from jax import lax
from jax.experimental import pallas as pl
from jax.experimental.pallas import tpu as pltpu


def _cem_kernel(rec_ref, res_ref, w13_ref, b13_ref, w2_ref, b2_ref, out_ref):
    B, N, C = rec_ref.shape
    K1 = w13_ref.shape[1]                      # C16 + 1 (c3 cols + fused c1 col)
    K = K1 - 1                                 # C16
    M = res_ref.shape[2]

    # --- fused c3 + c1 projection on the MXU (the c1 column is a free extra
    #     output lane: the c3 output is only C16 of 128/256 MXU lanes wide).
    #     N is a multiple of 8 so the (B, N, C) -> (B*N, C) flatten is a
    #     relabel, not a relayout copy.
    rec = rec_ref[...]                         # native dtype, MXU-only
    proj = jnp.dot(rec.reshape(B * N, C), w13_ref[...],
                   preferred_element_type=jnp.float32)
    proj = proj.reshape(B, N, K1) + b13_ref[...]        # f32 bias add
    r3 = proj[:, :, :K]                        # (B, N, K)   c3 features
    s1 = proj[:, :, K]                         # (B, N)      c1 logits

    # --- unnormalized softmax over N (denominator folded into the energy).
    m1 = jnp.max(s1, axis=-1, keepdims=True)
    e1 = jnp.exp(s1 - m1)                      # (B, N)
    z1 = jnp.sum(e1, axis=-1, keepdims=True)   # (B, 1)

    # --- c2 on the VPU: C16-deep multiply + sublane reduce; res is the small
    #     (C/16-channel) tensor so the f32 upcast is cheap (and needed for the
    #     VPU on v5e, which has no bf16 VALU).
    res = res_ref[...].astype(jnp.float32)     # (B, K, M), M on lanes
    s2 = jnp.sum(res * w2_ref[...], axis=1) + b2_ref[0, 0]   # (B, M)
    m2 = jnp.max(s2, axis=-1, keepdims=True)
    e2 = jnp.exp(s2 - m2)                      # (B, M)
    z2 = jnp.sum(e2, axis=-1, keepdims=True)   # (B, 1)

    # --- L2 normalize via EUP rsqrt ( == x / max(|x|, 1e-12) ).
    r3_ssq = jnp.sum(r3 * r3, axis=-1, keepdims=True)
    r3n = r3 * lax.rsqrt(jnp.maximum(r3_ssq, 1e-24))          # (B, N, K)
    res_ssq = jnp.sum(res * res, axis=1, keepdims=True)
    resn = res * lax.rsqrt(jnp.maximum(res_ssq, 1e-24))       # (B, K, M)

    # --- similarity with the (x + 1) / 2 affine folded into the contraction:
    #       tsc = 0.5 * (r3n . resn) + 0.5
    #     leaving only the clip as elementwise work on the (B, N, M) tile.
    r3h = 0.5 * r3n                            # scaling done in small (B,N,K) space
    if K <= 4:
        # Tiny C16 (this module: 2): a K-unrolled VPU FMA beats a per-batch
        # MXU push whose useful output is < 1 vreg (pure push/pop latency).
        tsc = jnp.full((B, N, M), 0.5, jnp.float32)
        for k in range(K):
            tsc = tsc + r3h[:, :, k:k + 1] * resn[:, k:k + 1, :]
    else:
        # Larger C16: MXU contraction; the +0.5 rides as an extra K column
        # (constant 0.5) against a matching ones row.
        r3aug = jnp.concatenate(
            [r3h, jnp.full((B, N, 1), 0.5, jnp.float32)], axis=-1)
        resaug = jnp.concatenate(
            [resn, jnp.ones((B, 1, M), jnp.float32)], axis=1)
        tsc = jnp.einsum('bnk,bkm->bnm', r3aug, resaug,
                         preferred_element_type=jnp.float32)
    tsc = jnp.clip(tsc, 1e-6, 1.0 - 1e-6)      # only VALU pass on (B, N, M)

    # --- energy = es^T tsc ec = (e1^T tsc e2) / (z1 * z2).  The e1
    #     contraction goes to the MXU (M stays lane-dense on the output);
    #     the final M-wide dot and the single divide stay on the VPU.
    e_row = jnp.einsum('bqn,bnm->bqm', e1[:, None, :], tsc,
                       preferred_element_type=jnp.float32)[:, 0, :]   # (B, M)
    raw = jnp.sum(e_row * e2, axis=-1, keepdims=True)                 # (B, 1)
    energy = raw / (z1 * z2)                                          # (B, 1)

    out_ref[...] = -jnp.sum(jnp.log(energy + 1e-6), axis=0, keepdims=True) / B


def cem_loss_pallas(rec_feat, res_feat, params):
    """rec_feat: (B, n_ph, n_q, C);  res_feat: (B, C//16, spatial...)."""
    w1, b1, w2, b2, w3, b3 = params
    B, n_ph, n_q, C = rec_feat.shape
    C16 = C // 16
    N = n_ph * n_q

    rec = rec_feat.reshape(B, N, C)            # native dtype (no wrapper upcast)
    res = res_feat.reshape(B, C16, -1)         # keep (B, C16, M): no transpose
    M = res.shape[-1]

    # Fuse c1 into c3: one extra MXU output column + bias entry.  Weights go
    # in rec's dtype so a bf16 input gets bf16 MXU operands (f32 accumulate).
    w13 = jnp.concatenate([w3.reshape(C, C16), w1.reshape(C, 1)],
                          axis=1).astype(rec.dtype)                 # (C, C16+1)
    b13 = jnp.concatenate([b3.reshape(1, C16), b1.reshape(1, 1)],
                          axis=1).astype(jnp.float32)               # (1, C16+1)
    w2c = w2.reshape(C16, 1).astype(jnp.float32)
    b2s = b2.reshape(1, 1).astype(jnp.float32)

    vmem = pltpu.MemorySpace.VMEM
    smem = pltpu.MemorySpace.SMEM

    # Single-block VMEM budget: inputs + the (B, N, M) similarity temporaries,
    # with 2x headroom.  32 MiB floor raises v5e's 16 MiB scoped default;
    # 64 MiB cap respects v7x physical VMEM.  For production shapes that
    # approach this, switch to an N/M-tiled grid (streamed tsc, per-tile
    # accumulators) with dimension_semantics=("parallel", ...) so both v7x
    # TensorCores are used — at the module's shapes one step is faster.
    est = 4 * (B * N * C + B * C16 * M + 4 * B * N * M
               + 2 * B * N * (C16 + 1) + C * (C16 + 1)) + (1 << 20)
    vmem_limit = int(min(max(2 * est, 32 * 1024 * 1024), 64 * 1024 * 1024))

    out = pl.pallas_call(
        _cem_kernel,
        out_shape=jax.ShapeDtypeStruct((1, 1), jnp.float32),
        in_specs=[
            pl.BlockSpec(memory_space=vmem),   # rec  (B, N, C)
            pl.BlockSpec(memory_space=vmem),   # res  (B, C16, M)
            pl.BlockSpec(memory_space=vmem),   # w13  (C, C16+1)
            pl.BlockSpec(memory_space=vmem),   # b13  (1, C16+1)
            pl.BlockSpec(memory_space=vmem),   # w2   (C16, 1)
            pl.BlockSpec(memory_space=smem),   # b2   (1, 1) scalar
        ],
        out_specs=pl.BlockSpec(memory_space=vmem),
        compiler_params=pltpu.CompilerParams(vmem_limit_bytes=vmem_limit),
    )(rec, res, w13, b13, w2c, b2s)
    return out[0, 0]


def cem_loss_ref(rec_feat, res_feat, params):
    """Pure-JAX reference mirroring the PyTorch forward."""
    w1, b1, w2, b2, w3, b3 = params
    B, n_ph, n_q, C = rec_feat.shape
    C16 = C // 16
    rec = rec_feat.reshape(B, -1, C).astype(jnp.float32)
    res = res_feat.reshape(B, C16, -1).transpose(0, 2, 1).astype(jnp.float32)
    es = jax.nn.softmax(rec @ w1 + b1, axis=-2)
    ec = jax.nn.softmax(res @ w2 + b2, axis=-2)
    r3 = rec @ w3 + b3
    r3n = r3 / jnp.maximum(jnp.linalg.norm(r3, axis=-1, keepdims=True), 1e-12)
    resn = res / jnp.maximum(jnp.linalg.norm(res, axis=-1, keepdims=True), 1e-12)
    tsc = jnp.einsum('bnk,bmk->bnm', r3n, resn)
    tsc = jnp.clip((tsc + 1.0) / 2.0, 1e-6, 1.0 - 1e-6)
    energy = jnp.einsum('bnm,bn->bm', tsc, es[..., 0])
    energy = jnp.einsum('bm,bm->b', energy, ec[..., 0])
    return -jnp.sum(jnp.log(energy + 1e-6)) / B


def init_params(key, hidden_dim):
    """Deterministic synthetic init matching nn.Linear shapes (stored as (in, out))."""
    c16 = hidden_dim // 16
    k1, k2, k3, k4, k5, k6 = jax.random.split(key, 6)
    w1 = 0.1 * jax.random.normal(k1, (hidden_dim, 1), jnp.float32)    # c1.weight^T
    b1 = 0.1 * jax.random.normal(k2, (1, 1), jnp.float32)             # c1.bias
    w2 = 0.1 * jax.random.normal(k3, (c16, 1), jnp.float32)           # c2.weight^T
    b2 = 0.1 * jax.random.normal(k4, (1, 1), jnp.float32)             # c2.bias
    w3 = 0.1 * jax.random.normal(k5, (hidden_dim, c16), jnp.float32)  # c3.weight^T
    b3 = 0.1 * jax.random.normal(k6, (1, c16), jnp.float32)           # c3.bias
    return (w1, b1, w2, b2, w3, b3)


if __name__ == "__main__":
    hidden_dim = 32
    B, n_ph, n_q = 2, 2, 4          # rec tokens N = 8 (multiple of 8)
    M = 16                          # res spatial size

    key = jax.random.PRNGKey(0)
    k_rec, k_res, k_par = jax.random.split(key, 3)
    rec_feat = jax.random.normal(k_rec, (B, n_ph, n_q, hidden_dim), jnp.float32)
    res_feat = jax.random.normal(k_res, (B, hidden_dim // 16, M), jnp.float32)
    params = init_params(k_par, hidden_dim)

    loss = jax.jit(cem_loss_pallas)(rec_feat, res_feat, params)
    loss = jax.block_until_ready(loss)

    ref = cem_loss_ref(rec_feat, res_feat, params)
    assert jnp.allclose(loss, ref, atol=1e-3, rtol=1e-3), (loss, ref)

    print("KERNEL_OK")
</pallas_src>

<mosaic_0001>
module attributes {stable_mosaic.version = 11 : i64} {
  func.func @_cem_kernel(%arg0: memref<2x8x32xf32, #tpu.memory_space<vmem>>, %arg1: memref<2x2x16xf32, #tpu.memory_space<vmem>>, %arg2: memref<32x3xf32, #tpu.memory_space<vmem>>, %arg3: memref<1x3xf32, #tpu.memory_space<vmem>>, %arg4: memref<2x1xf32, #tpu.memory_space<vmem>>, %arg5: memref<1x1xf32, #tpu.memory_space<smem>>, %arg6: memref<1x1xf32, #tpu.memory_space<vmem>>) attributes {dimension_semantics = [], scalar_prefetch = 0 : i64, scratch_operands = 0 : i64, tpu.core_type = #tpu.core_type<tc>} {
    %c0 = arith.constant 0 : index
    %c0_0 = arith.constant 0 : index
    %c0_1 = arith.constant 0 : index
    %0 = vector.load %arg0[%c0, %c0_0, %c0_1] : memref<2x8x32xf32, #tpu.memory_space<vmem>>, vector<2x8x32xf32>
    %1 = vector.shape_cast %0 : vector<2x8x32xf32> to vector<16x32xf32>
    %c0_2 = arith.constant 0 : index
    %c0_3 = arith.constant 0 : index
    %2 = vector.load %arg2[%c0_2, %c0_3] : memref<32x3xf32, #tpu.memory_space<vmem>>, vector<32x3xf32>
    %cst = arith.constant dense<0.000000e+00> : vector<16x3xf32>
    %3 = tpu.matmul %1, %2, %cst {dimension_numbers = #tpu.dot_dimension_numbers<[1], [0], [0], [1], [0, 0, 1, 1], [], []>} : vector<16x32xf32>, vector<32x3xf32>, vector<16x3xf32> -> vector<16x3xf32>
    %4 = vector.shape_cast %3 : vector<16x3xf32> to vector<2x8x3xf32>
    %c0_4 = arith.constant 0 : index
    %c0_5 = arith.constant 0 : index
    %5 = vector.load %arg3[%c0_4, %c0_5] : memref<1x3xf32, #tpu.memory_space<vmem>>, vector<1x3xf32>
    %6 = vector.shape_cast %5 : vector<1x3xf32> to vector<1x1x3xf32>
    %7 = vector.broadcast %6 : vector<1x1x3xf32> to vector<2x8x3xf32>
    %8 = arith.addf %4, %7 : vector<2x8x3xf32>
    %9 = vector.extract_strided_slice %8 {offsets = [0, 0, 0], sizes = [2, 8, 2], strides = [1, 1, 1]} : vector<2x8x3xf32> to vector<2x8x2xf32>
    %10 = vector.extract_strided_slice %8 {offsets = [0, 0, 2], sizes = [2, 8, 1], strides = [1, 1, 1]} : vector<2x8x3xf32> to vector<2x8x1xf32>
    %11 = vector.shape_cast %10 : vector<2x8x1xf32> to vector<2x8xf32>
    %cst_6 = arith.constant dense<0xFF800000> : vector<2xf32>
    %12 = vector.multi_reduction <maximumf>, %11, %cst_6 [1] : vector<2x8xf32> to vector<2xf32>
    %13 = vector.shape_cast %12 : vector<2xf32> to vector<2x1xf32>
    %14 = vector.broadcast %13 : vector<2x1xf32> to vector<2x8xf32>
    %15 = arith.subf %11, %14 : vector<2x8xf32>
    %16 = math.exp %15 : vector<2x8xf32>
    %cst_7 = arith.constant dense<0.000000e+00> : vector<2xf32>
    %17 = vector.multi_reduction <add>, %16, %cst_7 [1] : vector<2x8xf32> to vector<2xf32>
    %18 = vector.shape_cast %17 : vector<2xf32> to vector<2x1xf32>
    %c0_8 = arith.constant 0 : index
    %c0_9 = arith.constant 0 : index
    %c0_10 = arith.constant 0 : index
    %19 = vector.load %arg1[%c0_8, %c0_9, %c0_10] : memref<2x2x16xf32, #tpu.memory_space<vmem>>, vector<2x2x16xf32>
    %c0_11 = arith.constant 0 : index
    %c0_12 = arith.constant 0 : index
    %20 = vector.load %arg4[%c0_11, %c0_12] : memref<2x1xf32, #tpu.memory_space<vmem>>, vector<2x1xf32>
    %21 = vector.shape_cast %20 : vector<2x1xf32> to vector<1x2x1xf32>
    %22 = vector.broadcast %21 : vector<1x2x1xf32> to vector<2x2x16xf32>
    %23 = arith.mulf %19, %22 : vector<2x2x16xf32>
    %cst_13 = arith.constant dense<0.000000e+00> : vector<2x16xf32>
    %24 = vector.multi_reduction <add>, %23, %cst_13 [1] : vector<2x2x16xf32> to vector<2x16xf32>
    %c0_14 = arith.constant 0 : index
    %c0_15 = arith.constant 0 : index
    %25 = memref.load %arg5[%c0_14, %c0_15] : memref<1x1xf32, #tpu.memory_space<smem>>
    %26 = vector.broadcast %25 : f32 to vector<2x16xf32>
    %27 = arith.addf %24, %26 : vector<2x16xf32>
    %cst_16 = arith.constant dense<0xFF800000> : vector<2xf32>
    %28 = vector.multi_reduction <maximumf>, %27, %cst_16 [1] : vector<2x16xf32> to vector<2xf32>
    %29 = vector.shape_cast %28 : vector<2xf32> to vector<2x1xf32>
    %30 = vector.broadcast %29 : vector<2x1xf32> to vector<2x16xf32>
    %31 = arith.subf %27, %30 : vector<2x16xf32>
    %32 = math.exp %31 : vector<2x16xf32>
    %cst_17 = arith.constant dense<0.000000e+00> : vector<2xf32>
    %33 = vector.multi_reduction <add>, %32, %cst_17 [1] : vector<2x16xf32> to vector<2xf32>
    %34 = vector.shape_cast %33 : vector<2xf32> to vector<2x1xf32>
    %35 = arith.mulf %9, %9 : vector<2x8x2xf32>
    %cst_18 = arith.constant dense<0.000000e+00> : vector<2x8xf32>
    %36 = vector.multi_reduction <add>, %35, %cst_18 [2] : vector<2x8x2xf32> to vector<2x8xf32>
    %37 = vector.shape_cast %36 : vector<2x8xf32> to vector<2x8x1xf32>
    %cst_19 = arith.constant 1.000000e-24 : f32
    %38 = vector.broadcast %cst_19 : f32 to vector<2x8x1xf32>
    %39 = arith.maximumf %37, %38 : vector<2x8x1xf32>
    %40 = math.rsqrt %39 : vector<2x8x1xf32>
    %41 = vector.broadcast %40 : vector<2x8x1xf32> to vector<2x8x2xf32>
    %42 = arith.mulf %9, %41 : vector<2x8x2xf32>
    %43 = arith.mulf %19, %19 : vector<2x2x16xf32>
    %cst_20 = arith.constant dense<0.000000e+00> : vector<2x16xf32>
    %44 = vector.multi_reduction <add>, %43, %cst_20 [1] : vector<2x2x16xf32> to vector<2x16xf32>
    %45 = vector.shape_cast %44 : vector<2x16xf32> to vector<2x1x16xf32>
    %cst_21 = arith.constant 1.000000e-24 : f32
    %46 = vector.broadcast %cst_21 : f32 to vector<2x1x16xf32>
    %47 = arith.maximumf %45, %46 : vector<2x1x16xf32>
    %48 = math.rsqrt %47 : vector<2x1x16xf32>
    %49 = vector.broadcast %48 : vector<2x1x16xf32> to vector<2x2x16xf32>
    %50 = arith.mulf %19, %49 : vector<2x2x16xf32>
    %cst_22 = arith.constant 5.000000e-01 : f32
    %51 = vector.broadcast %cst_22 : f32 to vector<2x8x2xf32>
    %52 = arith.mulf %51, %42 : vector<2x8x2xf32>
    %cst_23 = arith.constant 5.000000e-01 : f32
    %53 = vector.broadcast %cst_23 : f32 to vector<2x8x16xf32>
    %54 = vector.extract_strided_slice %52 {offsets = [0, 0, 0], sizes = [2, 8, 1], strides = [1, 1, 1]} : vector<2x8x2xf32> to vector<2x8x1xf32>
    %55 = vector.extract_strided_slice %50 {offsets = [0, 0, 0], sizes = [2, 1, 16], strides = [1, 1, 1]} : vector<2x2x16xf32> to vector<2x1x16xf32>
    %56 = vector.broadcast %54 : vector<2x8x1xf32> to vector<2x8x16xf32>
    %57 = vector.broadcast %55 : vector<2x1x16xf32> to vector<2x8x16xf32>
    %58 = arith.mulf %56, %57 : vector<2x8x16xf32>
    %59 = arith.addf %53, %58 : vector<2x8x16xf32>
    %60 = vector.extract_strided_slice %52 {offsets = [0, 0, 1], sizes = [2, 8, 1], strides = [1, 1, 1]} : vector<2x8x2xf32> to vector<2x8x1xf32>
    %61 = vector.extract_strided_slice %50 {offsets = [0, 1, 0], sizes = [2, 1, 16], strides = [1, 1, 1]} : vector<2x2x16xf32> to vector<2x1x16xf32>
    %62 = vector.broadcast %60 : vector<2x8x1xf32> to vector<2x8x16xf32>
    %63 = vector.broadcast %61 : vector<2x1x16xf32> to vector<2x8x16xf32>
    %64 = arith.mulf %62, %63 : vector<2x8x16xf32>
    %65 = arith.addf %59, %64 : vector<2x8x16xf32>
    %cst_24 = arith.constant 9.99999997E-7 : f32
    %cst_25 = arith.constant 0.999998986 : f32
    %66 = vector.broadcast %cst_24 : f32 to vector<2x8x16xf32>
    %67 = arith.maximumf %66, %65 : vector<2x8x16xf32>
    %68 = vector.broadcast %cst_25 : f32 to vector<2x8x16xf32>
    %69 = arith.minimumf %68, %67 : vector<2x8x16xf32>
    %70 = vector.shape_cast %16 : vector<2x8xf32> to vector<2x1x8xf32>
    "tpu.trace_start"() <{level = 10 : i32, message = "bqn,bnm->bqm"}> : () -> ()
    %cst_26 = arith.constant dense<0.000000e+00> : vector<2x1x16xf32>
    %71 = tpu.matmul %70, %69, %cst_26 {dimension_numbers = #tpu.dot_dimension_numbers<[2], [1], [1], [2], [0, 0, 0, 1, 1, 2], [0], [0]>} : vector<2x1x8xf32>, vector<2x8x16xf32>, vector<2x1x16xf32> -> vector<2x1x16xf32>
    "tpu.trace_stop"() : () -> ()
    %72 = vector.shape_cast %71 : vector<2x1x16xf32> to vector<2x16xf32>
    %73 = arith.mulf %72, %32 : vector<2x16xf32>
    %cst_27 = arith.constant dense<0.000000e+00> : vector<2xf32>
    %74 = vector.multi_reduction <add>, %73, %cst_27 [1] : vector<2x16xf32> to vector<2xf32>
    %75 = vector.shape_cast %74 : vector<2xf32> to vector<2x1xf32>
    %76 = arith.mulf %18, %34 : vector<2x1xf32>
    %77 = arith.divf %75, %76 : vector<2x1xf32>
    %cst_28 = arith.constant 9.99999997E-7 : f32
    %78 = vector.broadcast %cst_28 : f32 to vector<2x1xf32>
    %79 = arith.addf %77, %78 : vector<2x1xf32>
    %80 = math.log %79 : vector<2x1xf32>
    %cst_29 = arith.constant dense<0.000000e+00> : vector<1xf32>
    %81 = vector.multi_reduction <add>, %80, %cst_29 [0] : vector<2x1xf32> to vector<1xf32>
    %82 = vector.shape_cast %81 : vector<1xf32> to vector<1x1xf32>
    %cst_30 = arith.constant 0.000000e+00 : f32
    %83 = vector.broadcast %cst_30 : f32 to vector<1x1xf32>
    %84 = arith.subf %83, %82 : vector<1x1xf32>
    %cst_31 = arith.constant 2.000000e+00 : f32
    %85 = vector.broadcast %cst_31 : f32 to vector<1x1xf32>
    %86 = arith.divf %84, %85 : vector<1x1xf32>
    %c0_32 = arith.constant 0 : index
    %c0_33 = arith.constant 0 : index
    %87 = vector.load %arg6[%c0_32, %c0_33] : memref<1x1xf32, #tpu.memory_space<vmem>>, vector<1x1xf32>
    tpu.vector_store %arg6[%c0_32, %c0_33], %86 {strides = array<i32>} : memref<1x1xf32, #tpu.memory_space<vmem>>, vector<1x1xf32>,
    return
  }
}

</mosaic_0001>

<bundles_post_ra>
// kernel: cem_loss_pallas.1
= control target key start
LH: loop header
LB: loop body
LE: loop exit
PB: predicated region body
PF: predicated region fallthrough
CT: control target
= control target key end

     0   :  { %s582_s0 = inlined_call_operand.vmem [shape: f32[2,8,32], index: 0, kind: input, shape index: {}]   ;;  %s583_s1 = inlined_call_operand.vmem [shape: f32[2,2,16], index: 1, kind: input, shape index: {}]   ;;  %s584_s2 = inlined_call_operand.vmem [shape: f32[32,3], index: 2, kind: input, shape index: {}]   ;;  %s585_s3 = inlined_call_operand.vmem [shape: f32[1,3], index: 3, kind: input, shape index: {}]   ;;  %s586_s4 = inlined_call_operand.vmem [shape: f32[2,1], index: 4, kind: input, shape index: {}]   ;;  %s587_s5 = inlined_call_operand.<no memory space> [shape: f32[1,1], index: 5, kind: input, shape index: {}]   ;;  %s588_s6 = inlined_call_operand.hbm [shape: f32[1,1], index: 6, kind: output, shape index: {}]  }
   0x1   :  { %v30_v0 = vld [vmem:[%s584_s2 + $0x18] sm:$0xff]  ;;  %v29_v1 = vld [vmem:[%s584_s2 + $0x10] sm:$0xff]  ;;  %v28_v2 = vld [vmem:[%s584_s2 + $0x8] sm:$0xff] }
   0x2   :  { %50 = vmatpush.msra.mxu0 %v30_v0  ;;  %388 = vmatpush.msra.mxu3 %v30_v0 }
   0x3   :  { %12 = vsyncpa [#allocation4], 0  ;;  %v27_v3 = vld [vmem:[%s584_s2] sm:$0xff]  ;;  %vm31_vm0 = vcmask 261120   ;;  %v26_v5 = vld [vmem:[%s582_s0 + $0x8] sm:$0xff]  ;;  %v454_v6 = vmov 2   ;;  %v75_v17 = vlaneseq }
   0x4   :  { %51 = vmatpush.msra.mxu0 %v29_v1  ;;  %389 = vmatpush.msra.mxu3 %v29_v1  ;;  %v25_v4 = vld [vmem:[%s582_s0] sm:$0xff]  ;;  %vm168_vm1 = vcmask 15360   ;;  %v455_v18 = vmov 1   ;;  %v456_v19 = vmov 0   ;;  %vm79_vm2 = vcmask 1041409   ;;  %s375_s17 = sshll.u32 %s588_s6, 4  ;;  %s376_s17 = int_to_ptr.hbm [resolvable:$true] %s375_s17 }
   0x5   :  { %397 = vset.pattern.permute.xlu0 %v454_v6  ;;  %v405_v7 = vld [vmem:[%s585_s3] ss:$0 sm:$0xff]  ;;  %398 = vset.pattern.permute.xlu2 %v456_v19  ;;  %v527_v20 = vand.u32 127, %v75_v17  ;;  %vm82_vm3 = vcmask 58368   ;;  %v544_v49 = vld [vmem:[%s583_s1 + $0x2] sm:$0x3] }
   0x6   :  { %52 = vmatpush.msra.mxu0 %v28_v2  ;;  %390 = vmatpush.msra.mxu3 %v28_v2  ;;  %v114_v48 = vld [vmem:[%s586_s4] sm:$0x3]  ;;  %v200_v50 = vmul.f32 %v544_v49, %v544_v49  ;;  %vm122_vm10 = vcmask 123904  }
   0x7   :  { %399 = vset.pattern.permute.xlu1 %v456_v19  ;;  %v552_v54 = vld [vmem:[%s583_s1] sm:$0x3] }
   0x8   :  { %53 = vmatpush.msra.mxu0 %v27_v3  ;;  %391 = vmatpush.msra.mxu3 %v27_v3  ;;  %v208_v51 = vsel %vm122_vm10, %v200_v50, 0.0  ;;  %v199_v55 = vmul.f32 %v552_v54, %v552_v54 }
   0x9   :  { %384 = vmatmul.msk.f32.vlgmr.msra.gmra.mxu0 %vm31_vm0, %v25_v4  ;;  %385 = vmatmul.msk.f32.vlgmr.msra.gmra.mxu3 %vm31_vm0, %v26_v5  ;;  %v209_v52 = vrot.slane %v208_v51, 4 }
   0xa   :  { %v201_v57 = vsel %vm122_vm10, %v199_v55, 0.0 }
   0xb   :  { %v210_v53 = vadd.f32 %v209_v52, %v208_v51  ;;  %v202_v59 = vrot.slane %v201_v57, 4 }
   0xd   :  { %v211_v56 = vrot.slane %v210_v53, 2  ;;  %v203_v61 = vadd.f32 %v202_v59, %v201_v57 }
   0xf   :  { %v212_v58 = vadd.f32 %v211_v56, %v210_v53  ;;  %v204_v63 = vrot.slane %v203_v61, 2 }
  0x11   :  { %v213_v60 = vrot.slane %v212_v58, 1  ;;  %v205_v1 = vadd.f32 %v204_v63, %v203_v61 }
  0x13   :  { %v214_v62 = vadd.f32 %v213_v60, %v212_v58  ;;  %v206_v2 = vrot.slane %v205_v1, 1 }
  0x15   :  { %v216_v0 = vmax.f32 %v214_v62, 1e-24  ;;  %v207_v4 = vadd.f32 %v206_v2, %v205_v1 }
  0x17   :  { %vm233_vm11 = vweird.f32 %v216_v0 }
  0x86   :  { %v55_v8 = vpop.f32.mrf.mxu0 }
  0x87   :  { %v516_v9 = vadd.f32 %v405_v7, %v55_v8 }
  0x89   :  { %70 = vperm.xlu0 %397, %v516_v9   ;;  %v166_v14 = vmul.f32 %v516_v9, %v516_v9 }
  0x8b   :  { %v169_v15 = vsel %vm168_vm1, %v166_v14, 0.0 }
  0x8c   :  { %v58_v10 = vpop.f32.mrf.mxu3 }
  0x8d   :  { %v519_v11 = vadd.f32 %v405_v7, %v58_v10 }
  0x8f   :  { %v167_v12 = vmul.f32 %v519_v11, %v519_v11 }
  0x91   :  { %73 = vperm.xlu0 %397, %v519_v11   ;;  %v172_v13 = vsel %vm168_vm1, %v167_v12, 0.0  ;;  %vm275_vm1 = vcmask 64512  }
  0x92   :  { %173 = vadd.xlane.f32.xlu1 %v172_v13 }
  0x99   :  { %400 = vset.pattern.permute.xlu0 %v455_v18 }
  0x9a   :  { %170 = vadd.xlane.f32.xlu1 %v169_v15 }
  0xfb   :  { %v71_v16 = vpop.permute.xlu0 %70 }
  0xfc   :  { %v77_v22 = vperm.slane %v71_v16, %v527_v20 }
 0x103   :  { %v74_v21 = vpop.permute.xlu0 %73 }
 0x104   :  { %v78_v23 = vperm.slane %v74_v21, %v527_v20 }
 0x105   :  { %v174_v24 = vpop.xlane.xlu1 %173 }
 0x106   :  { %v176_v25 = vmax.f32 %v174_v24, 1e-24  ;;  %v80_v26 = vsel %vm79_vm2, %v78_v23, %v77_v22 }
 0x107   :  { %v83_v27 = vsel %vm82_vm3, %v80_v26, -inf }
 0x108   :  { %406 = vrsqrt.f32 %v176_v25  ;;  %84 = vmax.xlane.f32.xlu2 %v83_v27  ;;  %vm193_vm5 = vweird.f32 %v176_v25 }
 0x10d   :  { %v171_v28 = vpop.xlane.xlu1 %170 }
 0x10e   :  { %v407_v29 = vpop.eup %406  ;;  %v175_v30 = vmax.f32 %v171_v28, 1e-24 }
 0x10f   :  { %v188_v31 = vmul.f32 %v407_v29, %v176_v25  ;;  %vm194_vm4 = vweird.f32 %v407_v29 }
 0x110   :  { %408 = vrsqrt.f32 %v175_v30  ;;  %vm195_vm6 = vmor %vm193_vm5, %vm194_vm4  ;;  %vm183_vm8 = vweird.f32 %v175_v30 }
 0x111   :  { %v189_v32 = vmul.f32 %v407_v29, %v188_v31  ;;  %410 = vrsqrt.f32 %v216_v0 }
 0x113   :  { %v190_v33 = vmul.f32 0.5, %v189_v32 }
 0x115   :  { %v191_v34 = vsub.f32 1.5, %v190_v33 }
 0x116   :  { %v409_v35 = vpop.eup %408 }
 0x117   :  { %v178_v36 = vmul.f32 %v409_v35, %v175_v30  ;;  %v192_v37 = vmul.f32 %v407_v29, %v191_v34  ;;  %vm184_vm7 = vweird.f32 %v409_v35  ;;  %v411_v3 = vpop.eup %410 }
 0x118   :  { %vm185_vm9 = vmor %vm183_vm8, %vm184_vm7  ;;  %v228_v5 = vmul.f32 %v411_v3, %v216_v0  ;;  %vm234_vm12 = vweird.f32 %v411_v3  ;;  %vm366_vm8 = vcmask 0  }
 0x119   :  { %v179_v38 = vmul.f32 %v409_v35, %v178_v36  ;;  %v196_v39 = vsel %vm195_vm6, %v407_v29, %v192_v37  ;;  %vm235_vm13 = vmor %vm233_vm11, %vm234_vm12  ;;  %vm349_vm6 = vcmask 1041408  }
 0x11a   :  { %v198_v40 = vmul.f32 %v196_v39, %v519_v11  ;;  %v229_v7 = vmul.f32 %v411_v3, %v228_v5 }
 0x11b   :  { %v180_v41 = vmul.f32 0.5, %v179_v38 }
 0x11c   :  { %v240_v42 = vmul.f32 0.5, %v198_v40  ;;  %v230_v8 = vmul.f32 0.5, %v229_v7 }
 0x11d   :  { %v181_v43 = vsub.f32 1.5, %v180_v41 }
 0x11e   :  { %262 = vperm.xlu0 %400, %v240_v42   ;;  %v231_v12 = vsub.f32 1.5, %v230_v8 }
 0x11f   :  { %v182_v44 = vmul.f32 %v409_v35, %v181_v43 }
 0x120   :  { %248 = vperm.xlu2 %398, %v240_v42   ;;  %v232_v21 = vmul.f32 %v411_v3, %v231_v12 }
 0x121   :  { %v186_v45 = vsel %vm185_vm9, %v409_v35, %v182_v44 }
 0x122   :  { %v197_v46 = vmul.f32 %v186_v45, %v516_v9  ;;  %v236_v25 = vsel %vm235_vm13, %v411_v3, %v232_v21 }
 0x123   :  { %v238_v27 = vmul.f32 %v236_v25, %v544_v49 }
 0x124   :  { %v239_v47 = vmul.f32 0.5, %v197_v46 }
 0x125   :  { %v252_v31 = vperm.slane %v238_v27, 0  ;;  %v266_v33 = vperm.slane %v238_v27, 1 }
 0x126   :  { %243 = vperm.xlu1 %399, %v239_v47   ;;  %401 = vset.pattern.permute.xlu0 %v454_v6 }
 0x128   :  { %402 = vset.pattern.permute.xlu2 %v455_v18 }
 0x129   :  { %258 = vperm.xlu2 %402, %v239_v47  }
 0x12e   :  { %117 = vperm.xlu1 %399, %v114_v48  }
 0x131   :  { %403 = vset.pattern.permute.xlu2 %v454_v6  ;;  %v215_v6 = vmax.f32 %v207_v4, 1e-24 }
 0x133   :  { %412 = vrsqrt.f32 %v215_v6  ;;  %vm223_vm14 = vweird.f32 %v215_v6 }
 0x139   :  { %v413_v10 = vpop.eup %412 }
 0x13a   :  { %v218_v16 = vmul.f32 %v413_v10, %v215_v6  ;;  %vm224_vm15 = vweird.f32 %v413_v10 }
 0x13b   :  { %vm225_vm0 = vmor %vm223_vm14, %vm224_vm15 }
 0x13c   :  { %v219_v24 = vmul.f32 %v413_v10, %v218_v16 }
 0x13e   :  { %v220_v26 = vmul.f32 0.5, %v219_v24 }
 0x140   :  { %v221_v29 = vsub.f32 1.5, %v220_v26 }
 0x17b   :  { %v85_v13 = vpop.xlane.xlu2 %84 }
 0x17c   :  { %v87_v14 = vperm.slane %v85_v13, 0  ;;  %v88_v15 = vperm.slane %v85_v13, 1 }
 0x17e   :  { %v91_v17 = vsub.f32 %v516_v9, %v87_v14  ;;  %v92_v19 = vsub.f32 %v519_v11, %v88_v15  ;;  %v222_v9 = vmul.f32 %v413_v10, %v221_v29 }
 0x180   :  { %v93_v22 = vmul.f32 1.442695, %v91_v17  ;;  %v95_v23 = vmul.f32 1.442695, %v92_v19  ;;  %v226_v34 = vsel %vm225_vm0, %v413_v10, %v222_v9 }
 0x181   :  { %v237_v38 = vmul.f32 %v226_v34, %v552_v54 }
 0x182   :  { %414 = vpow2.f32 %v93_v22 }
 0x183   :  { %416 = vpow2.f32 %v95_v23  ;;  %v249_v32 = vpop.permute.xlu2 %248  ;;  %v251_v40 = vperm.slane %v237_v38, 0  ;;  %v265_v42 = vperm.slane %v237_v38, 1 }
 0x184   :  { %v254_v11 = vmul.f32 %v252_v31, %v249_v32 }
 0x186   :  { %v256_v36 = vadd.f32 0.5, %v254_v11 }
 0x188   :  { %v415_v28 = vpop.eup %414 }
 0x189   :  { %v417_v30 = vpop.eup %416  ;;  %100 = vperm.xlu2 %403, %v415_v28  }
 0x18a   :  { %103 = vperm.xlu0 %401, %v417_v30  }
 0x18b   :  { %v259_v44 = vpop.permute.xlu2 %258 }
 0x18c   :  { %v267_v47 = vmul.f32 %v265_v42, %v259_v44 }
 0x190   :  { %v263_v35 = vpop.permute.xlu0 %262 }
 0x191   :  { %v268_v37 = vmul.f32 %v266_v33, %v263_v35 }
 0x192   :  { %404 = vset.pattern.permute.xlu0 %v455_v18 }
 0x193   :  { %v270_v39 = vadd.f32 %v268_v37, %v256_v36 }
 0x195   :  { %v272_v41 = vmax.f32 %v270_v39, 1e-06 }
 0x197   :  { %v274_v43 = vmin.f32 %v272_v41, 0.999999 }
 0x198   :  { %v244_v45 = vpop.permute.xlu1 %243 }
 0x199   :  { %v253_v46 = vmul.f32 %v251_v40, %v244_v45  ;;  %315 = vmatpush.msra.mxu2 %v274_v43 }
 0x19b   :  { %v255_v48 = vadd.f32 0.5, %v253_v46 }
 0x19d   :  { %v269_v50 = vadd.f32 %v267_v47, %v255_v48 }
 0x19f   :  { %v271_v51 = vmax.f32 %v269_v50, 1e-06  ;;  %v457_v50 = vmov 2.0  }
 0x1a0   :  { %v118_v52 = vpop.permute.xlu1 %117 }
 0x1a1   :  { %v120_v53 = vmul.f32 %v118_v52, %v552_v54  ;;  %v121_v18 = vmul.f32 %v118_v52, %v544_v49  ;;  %v273_v55 = vmin.f32 %v271_v51, 0.999999  ;;  %v138_v49 = vstv %s587_s5  ;;  %s458_s5 = smov [#allocation3]  }
 0x1a2   :  { %s373_s14 = sshll.u32 %s458_s5, 4  ;;  %s374_s14 = int_to_ptr.vmem [resolvable:$true] %s373_s14 }
 0x1a3   :  { %v123_v56 = vsel %vm122_vm10, %v120_v53, 0.0  ;;  %v130_v57 = vsel %vm122_vm10, %v121_v18, 0.0  ;;  %293 = vmatpush.msra.mxu1 %v273_v55 }
 0x1a4   :  { %v124_v58 = vrot.slane %v123_v56, 4  ;;  %v131_v59 = vrot.slane %v130_v57, 4 }
 0x1a6   :  { %v125_v60 = vadd.f32 %v124_v58, %v123_v56  ;;  %v132_v61 = vadd.f32 %v131_v59, %v130_v57 }
 0x1a8   :  { %v126_v62 = vrot.slane %v125_v60, 2  ;;  %v133_v63 = vrot.slane %v132_v61, 2 }
 0x1aa   :  { %v127_v0 = vadd.f32 %v126_v62, %v125_v60  ;;  %v134_v1 = vadd.f32 %v133_v63, %v132_v61 }
 0x1ac   :  { %v128_v2 = vrot.slane %v127_v0, 1  ;;  %v135_v3 = vrot.slane %v134_v1, 1 }
 0x1ae   :  { %v129_v54 = vadd.f32 %v128_v2, %v127_v0  ;;  %v136_v4 = vadd.f32 %v135_v3, %v134_v1 }
 0x1b0   :  { %v139_v5 = vadd.f32 %v138_v49, %v129_v54  ;;  %v140_v6 = vadd.f32 %v138_v49, %v136_v4 }
 0x1b2   :  { %v143_v7 = vsel %vm79_vm2, %v140_v6, %v139_v5 }
 0x1b3   :  { %v145_v8 = vsel %vm122_vm10, %v143_v7, -inf }
 0x1b4   :  { %146 = vmax.xlane.f32.xlu0 %v145_v8 }
 0x1e3   :  { %v101_v10 = vpop.permute.xlu2 %100 }
 0x1e4   :  { %v105_v12 = vperm.slane %v101_v10, %v527_v20 }
 0x1e6   :  { %386 = vmatmul.msk.f32.vlgmr.msra.gmra.mxu1 %vm275_vm1, %v105_v12 }
 0x1fc   :  { %v104_v13 = vpop.permute.xlu0 %103 }
 0x1fd   :  { %v106_v14 = vperm.slane %v104_v13, %v527_v20 }
 0x1ff   :  { %387 = vmatmul.msk.f32.vlgmr.msra.gmra.mxu2 %vm275_vm1, %v106_v14  ;;  %v107_v15 = vsel %vm79_vm2, %v106_v14, %v105_v12 }
 0x200   :  { %v109_v16 = vsel %vm82_vm3, %v107_v15, 0.0 }
 0x201   :  { %110 = vadd.xlane.f32.xlu2 %v109_v16 }
 0x227   :  { %v147_v17 = vpop.xlane.xlu0 %146 }
 0x228   :  { %v149_v19 = vrot.slane %v147_v17, 1  ;;  %v152_v21 = vsub.f32 %v139_v5, %v147_v17 }
 0x22a   :  { %v153_v22 = vsub.f32 %v140_v6, %v149_v19  ;;  %v154_v23 = vmul.f32 1.442695, %v152_v21 }
 0x22c   :  { %v156_v24 = vmul.f32 1.442695, %v153_v22 }
 0x22e   :  { %418 = vpow2.f32 %v156_v24 }
 0x22f   :  { %420 = vpow2.f32 %v154_v23 }
 0x234   :  { %v419_v25 = vpop.eup %418 }
 0x235   :  { %v160_v26 = vrot.slane %v419_v25, 7  ;;  %v421_v27 = vpop.eup %420 }
 0x237   :  { %v161_v28 = vsel %vm79_vm2, %v160_v26, %v421_v27 }
 0x238   :  { %v163_v20 = vsel %vm122_vm10, %v161_v28, 0.0 }
 0x239   :  { %164 = vadd.xlane.f32.xlu1 %v163_v20 }
 0x263   :  { %v295_v29 = vpop.f32.mrf.mxu1 }
 0x264   :  { %v320_v32 = vmul.f32 %v421_v27, %v295_v29 }
 0x274   :  { %v111_v35 = vpop.xlane.xlu2 %110 }
 0x282   :  { %v317_v30 = vpop.f32.mrf.mxu2 }
 0x283   :  { %v321_v31 = vmul.f32 %v419_v25, %v317_v30 }
 0x285   :  { %v324_v9 = vrot.slane %v321_v31, 7 }
 0x287   :  { %v325_v11 = vsel %vm79_vm2, %v324_v9, %v320_v32 }
 0x288   :  { %v327_v33 = vsel %vm122_vm10, %v325_v11, 0.0 }
 0x289   :  { %328 = vadd.xlane.f32.xlu2 %v327_v33 }
 0x2ac   :  { %v165_v34 = vpop.xlane.xlu1 %164 }
 0x2ad   :  { %v330_v36 = vmul.f32 %v165_v34, %v111_v35 }
 0x2af   :  { %422 = vrcp.f32 %v330_v36  ;;  %v342_v42 = vand.u32 2147483648, %v330_v36  ;;  %vm336_vm4 = vweird.f32 %v330_v36  ;;  %v340_v43 = vand.u32 2147483647, %v330_v36 }
 0x2b0   :  { %424 = vrcp.f32 %v457_v50 }
 0x2b1   :  { %v343_v45 = vor.u32 1.1754944e-38, %v342_v42  ;;  %vm341_vm2 = vcmp.eq.f32.partialorder %v340_v43, 8.507059e+37 }
 0x2b5   :  { %v423_v37 = vpop.eup %422 }
 0x2b6   :  { %v332_v38 = vmul.f32 %v423_v37, %v330_v36  ;;  %vm337_vm3 = vweird.f32 %v423_v37  ;;  %v425_v52 = vpop.eup %424 }
 0x2b7   :  { %vm338_vm5 = vmor %vm336_vm4, %vm337_vm3  ;;  %v359_v53 = vmul.f32 2.0, %v425_v52  ;;  %vm363_vm7 = vweird.f32 %v425_v52 }
 0x2b8   :  { %v333_v39 = vsub.f32 1.0, %v332_v38 }
 0x2b9   :  { %v360_v57 = vsub.f32 1.0, %v359_v53 }
 0x2ba   :  { %v334_v40 = vmul.f32 %v423_v37, %v333_v39 }
 0x2bb   :  { %v361_v60 = vmul.f32 %v425_v52, %v360_v57 }
 0x2bc   :  { %v335_v41 = vadd.f32 %v423_v37, %v334_v40 }
 0x2bd   :  { %v362_v63 = vadd.f32 %v425_v52, %v361_v60 }
 0x2be   :  { %v339_v44 = vsel %vm338_vm5, %v423_v37, %v335_v41 }
 0x2bf   :  { %v344_v47 = vsel %vm341_vm2, %v343_v45, %v339_v44  ;;  %v364_v2 = vsel %vm363_vm7, %v425_v52, %v362_v63 }
 0x2fc   :  { %v329_v46 = vpop.xlane.xlu2 %328 }
 0x2fd   :  { %v345_v48 = vmul.f32 %v344_v47, %v329_v46 }
 0x2ff   :  { %v346_v51 = vadd.f32 1e-06, %v345_v48 }
 0x301   :  { %426 = vlog2.f32 %v346_v51 }
 0x307   :  { %v427_v18 = vpop.eup %426 }
 0x308   :  { %v348_v55 = vmul.f32 0.6931472, %v427_v18 }
 0x30a   :  { %v350_v56 = vsel %vm349_vm6, %v348_v55, 0.0 }
 0x30b   :  { %v351_v58 = vrot.slane %v350_v56, 4 }
 0x30d   :  { %v352_v59 = vadd.f32 %v351_v58, %v350_v56 }
 0x30f   :  { %v353_v61 = vrot.slane %v352_v59, 2 }
 0x311   :  { %v354_v62 = vadd.f32 %v353_v61, %v352_v59 }
 0x313   :  { %v355_v0 = vrot.slane %v354_v62, 1 }
 0x315   :  { %v356_v1 = vadd.f32 %v355_v0, %v354_v62 }
 0x317   :  { %v357_v3 = vsub.f32 0.0, %v356_v1 }
 0x319   :  { %v365_v49 = vmul.f32 %v364_v2, %v357_v3 }
 0x31b   :  { %367 = vst.msk [vmem:[#allocation3] sm:$0x1] %vm366_vm8, %v365_v49 }
 0x31c   :  { %378 = dma.vmem_to_hbm [thread:$0]  %s374_s14, 16, %s376_s17, [#allocation4]  }
 0x31d   :  { %452 = dma.done.wait [#allocation4], 16  }
 0x31e   :  { %453 = vsyncadd [#allocation4], 4294967280 }
 0x31f   :  { %383 = vsyncpa [#allocation4], 1 }

</bundles_post_ra>
